<compile_context>
chip_gen: v7x
topology: tpu7x:2x2x1
jax: 0.10.0
libtpu: 0.0.40
codegen_flags: <defaults>
</compile_context>

<pallas_src>
import numpy as np
import jax
import jax.numpy as jnp
from jax import lax
from jax.experimental import pallas as pl
from jax.experimental.pallas import tpu as pltpu


# ----------------------------------------------------------------------------
# Pallas kernel: fused "loss2" partial sums of FastCLIPLoss.forward
#   acc[0, col_tile] += sum_rows  diff * exp(diff - remote_u) * mask
#   with diff = logit_scale * (remote_feat @ local_feat.T - diag_sim),
# accumulated over the row (remote batch) grid axis.
# ----------------------------------------------------------------------------
def _loss2_kernel(scale_ref,    # SMEM (1,) f32 : logit_scale
                  off_ref,      # SMEM (1,) i32 : diagonal offset (rank offset)
                  rim_ref,      # VMEM (TR, D) bf16 : remote image tile
                  rtt_ref,      # VMEM (TR, D) bf16 : remote text  tile
                  ltxt_t_ref,   # VMEM (D, TL) bf16 : local text  (transposed)
                  limg_t_ref,   # VMEM (D, TL) bf16 : local image (transposed)
                  ruim_ref,     # VMEM (TR, 1) f32  : remote u_im tile
                  rutt_ref,     # VMEM (TR, 1) f32  : remote u_tt tile
                  acc_ref):     # VMEM (1, TL) f32  : resident partial-sum block
    j = pl.program_id(0)        # column tile over L      ("parallel")
    i = pl.program_id(1)        # row tile over remote R  ("arbitrary" reduction)

    @pl.when(i == 0)
    def _init():
        acc_ref[...] = jnp.zeros_like(acc_ref)

    tr = rim_ref.shape[0]
    tl = acc_ref.shape[1]
    scale = scale_ref[0]
    offset = off_ref[0]
    row0 = i * tr
    col0 = j * tl

    # Fold logit_scale into the (TR, D) remote tiles (TR*D VALU work instead of
    # TR*TL); diag is computed from the same scaled bf16 values for consistency.
    rim_bf = rim_ref[...]
    rtt_bf = rtt_ref[...]
    rim_s = (rim_bf.astype(jnp.float32) * scale).astype(jnp.bfloat16)
    rtt_s = (rtt_bf.astype(jnp.float32) * scale).astype(jnp.bfloat16)
    # diag_s = logit_scale * sum(remote_img * remote_txt, -1, keepdim=True)
    diag_s = jnp.sum(rim_s.astype(jnp.float32) * rtt_bf.astype(jnp.float32),
                     axis=-1, keepdims=True)                         # (TR, 1) f32

    dn = (((1,), (0,)), ((), ()))   # (TR, D) @ (D, TL): MXU-native, no transpose

    def partial_sum(apply_mask):
        if apply_mask:
            shift = col0 + offset - row0          # fold row0/col0 into the scalar
            on_diag = (lax.broadcasted_iota(jnp.int32, (tr, tl), 0)
                       == lax.broadcasted_iota(jnp.int32, (tr, tl), 1) + shift)

        def stream(remote_s, local_t_ref, u_ref):
            sim_s = lax.dot_general(remote_s, local_t_ref[...], dn,
                                    preferred_element_type=jnp.float32)  # (TR, TL)
            diff = sim_s - diag_s
            contrib = diff * jnp.exp(diff - u_ref[...])
            if apply_mask:
                contrib = jnp.where(on_diag, 0.0, contrib)
            return jnp.sum(contrib, axis=0, keepdims=True)               # (1, TL)

        # Sequential streams: only one (TR, TL) intermediate live at a time.
        return (stream(rim_s, ltxt_t_ref, ruim_ref)
                + stream(rtt_s, limg_t_ref, rutt_ref))

    # The diagonal band only hits row tiles overlapping
    # [col0 + offset, col0 + offset + TL); skip mask work everywhere else.
    intersects = jnp.logical_and(row0 < col0 + offset + tl,
                                 row0 + tr > col0 + offset)

    @pl.when(intersects)
    def _banded():
        acc_ref[...] = acc_ref[...] + partial_sum(True)

    @pl.when(jnp.logical_not(intersects))
    def _off_band():
        acc_ref[...] = acc_ref[...] + partial_sum(False)


# ----------------------------------------------------------------------------
# tile sizing / VMEM helpers
# ----------------------------------------------------------------------------
def _round_up(x, m):
    return (x + m - 1) // m * m


def _vmem_limit_bytes():
    try:
        cap = pltpu.get_tpu_info().vmem_capacity_bytes  # 64 MiB v7x, 128 MiB v5e/v6e
    except Exception:
        cap = 64 * 1024 * 1024
    return min(int(cap * 3 // 4), 100 * 1024 * 1024)


def _pick_tile_cols(L):
    """Column tile over the local batch (lane dim): multiple of 128 or full L."""
    if L % 128 != 0:
        return L
    for t in (512, 256, 128):
        if L % t == 0 and L // t >= 2:   # >=2 tiles lets v7x megacore shard them
            return t
    return L


def _pick_tile_rows(R, TL, D, budget_bytes):
    """Largest MXU-friendly row tile fitting the VMEM budget with bounded
    zero-padding waste (R is padded up to a multiple of the returned tile)."""
    def footprint(t):
        row_tiled = 2 * (2 * t * D * 2 + 2 * t * 4)    # bf16 feats + f32 u, 2x buffered
        resident = 2 * (D * TL * 2) + TL * 4           # single-buffered locals + acc
        temps = 12 * t * D + 12 * t * TL               # in-kernel f32/bf16 intermediates
        return row_tiled + resident + temps

    r8 = _round_up(max(R, 1), 8)
    candidates = [t for t in (1024, 512, 256, 128, 64, 32, 16, 8) if t <= r8]
    if not candidates:
        candidates = [8]
    fitting = [t for t in candidates if footprint(t) <= budget_bytes]
    if not fitting:
        fitting = [candidates[-1]]
    for t in fitting:                                  # biggest first, waste <= ~12.5%
        if _round_up(R, t) - R <= max(R // 8, 7):
            return t
    return min(fitting, key=lambda t: (_round_up(R, t) - R, -t))


def _resident_spec(shape, index_map):
    """BlockSpec for blocks whose index only changes on the rare outer axis:
    request single buffering (double-buffering them is pure VMEM waste)."""
    buffered = getattr(pl, "Buffered", None)
    if buffered is not None:
        try:
            return pl.BlockSpec(shape, index_map, pipeline_mode=buffered(1))
        except TypeError:
            pass
    return pl.BlockSpec(shape, index_map)


# ----------------------------------------------------------------------------
# pallas_call wrapper: returns the (1, L) accumulated loss2 numerator
# ----------------------------------------------------------------------------
def loss2_sum_pallas(rim, rtt, ltxt, limg, ruim, rutt, logit_scale, offset,
                     *, tile_rows=None, tile_cols=None):
    R, D = rim.shape
    L = ltxt.shape[0]

    if tile_cols is not None:
        TL = int(tile_cols)
        assert TL == L or (TL % 128 == 0 and L % TL == 0), "bad tile_cols"
    else:
        TL = _pick_tile_cols(L)

    vmem_limit = _vmem_limit_bytes()
    if tile_rows is not None:
        TR = _round_up(int(tile_rows), 8)
    else:
        TR = _pick_tile_rows(R, TL, D, int(vmem_limit * 0.9))

    # Pad the remote batch to a tile multiple: zero feature rows with u = 0
    # contribute exactly 0 (diff == 0 -> diff * exp(diff - 0) * 0-feature == 0).
    ruim = jnp.asarray(ruim, jnp.float32).reshape(R, 1)
    rutt = jnp.asarray(rutt, jnp.float32).reshape(R, 1)
    R_pad = _round_up(R, TR)
    if R_pad != R:
        pad = ((0, R_pad - R), (0, 0))
        rim, rtt = jnp.pad(rim, pad), jnp.pad(rtt, pad)
        ruim, rutt = jnp.pad(ruim, pad), jnp.pad(rutt, pad)

    # bf16 MXU operands; locals pre-transposed to (K=D, N=L) so the kernel's
    # dot_general needs no transpose and the output L-dim stays lane-dense.
    rim_bf = rim.astype(jnp.bfloat16)
    rtt_bf = rtt.astype(jnp.bfloat16)
    ltxt_t = ltxt.astype(jnp.bfloat16).T
    limg_t = limg.astype(jnp.bfloat16).T

    scale_arr = jnp.asarray(logit_scale, jnp.float32).reshape((1,))
    off_arr = jnp.asarray(offset, jnp.int32).reshape((1,))

    grid = (L // TL, R_pad // TR)   # (parallel column tiles, reduction row tiles)
    smem = pl.BlockSpec(memory_space=pltpu.MemorySpace.SMEM)

    cost = pl.CostEstimate(
        flops=4 * R_pad * L * D,
        transcendentals=2 * R_pad * L,
        bytes_accessed=(2 * R_pad + 2 * L) * D * 2 + 2 * R_pad * 4 + 4 * L)

    return pl.pallas_call(
        _loss2_kernel,
        out_shape=jax.ShapeDtypeStruct((1, L), jnp.float32),
        grid=grid,
        in_specs=[
            smem,                                            # logit_scale
            smem,                                            # offset
            pl.BlockSpec((TR, D), lambda j, i: (i, 0)),      # remote image tile
            pl.BlockSpec((TR, D), lambda j, i: (i, 0)),      # remote text  tile
            _resident_spec((D, TL), lambda j, i: (0, j)),    # local text.T
            _resident_spec((D, TL), lambda j, i: (0, j)),    # local image.T
            pl.BlockSpec((TR, 1), lambda j, i: (i, 0)),      # remote u_im tile
            pl.BlockSpec((TR, 1), lambda j, i: (i, 0)),      # remote u_tt tile
        ],
        out_specs=pl.BlockSpec((1, TL), lambda j, i: (0, j)),  # resident accumulator
        compiler_params=pltpu.CompilerParams(
            dimension_semantics=("parallel", "arbitrary"),
            vmem_limit_bytes=vmem_limit),
        cost_estimate=cost,
    )(scale_arr, off_arr, rim_bf, rtt_bf, ltxt_t, limg_t, ruim, rutt)


# ----------------------------------------------------------------------------
# forward() glue (FastCLIPLoss.forward with defaults:
#   multiply_tau=True, rho=8.0, no ref_features, no dist_features)
# ----------------------------------------------------------------------------
def fast_clip_loss_forward(features, remote_features, remote_u, loss1, u, sim,
                           logit_scale, offset, *, rho=8.0, loss_weight=1.0,
                           multiply_tau=True, tile_rows=None, tile_cols=None):
    limg, ltxt = features
    rim, rtt = remote_features
    ruim, rutt = remote_u
    loss1_im, loss1_tt = loss1
    u_im, u_tt = u
    del sim  # sim == remote @ local.T in FastCLIP; recomputed on the MXU in-kernel.
    # TODO(synk): ref_features / precomputed-sim override and the dist_features
    #             (distill) branch are not implemented; dist_loss = 0.0 matches
    #             the default call (dist_features=None).

    R = rim.shape[0]
    L = limg.shape[0]

    total = loss2_sum_pallas(rim, rtt, ltxt, limg, ruim, rutt,
                             logit_scale, offset,
                             tile_rows=tile_rows, tile_cols=tile_cols)
    # mean_r(loss2_im + loss2_tt) = total_masked_sum / (L * (R - 1))
    loss2_mean = jnp.sum(total) / (jnp.float32(L) * jnp.float32(R - 1))

    logit_scale = jnp.asarray(logit_scale, jnp.float32)
    loss = (jnp.mean(loss1_im + loss1_tt) + loss2_mean) / 2.0
    if multiply_tau:
        loss = loss / logit_scale                          # / logit_scale.detach()
        loss = loss + rho / logit_scale
        loss = loss + jnp.mean(u_im + u_tt) / 2.0 / logit_scale
    loss = loss * loss_weight
    return loss, jnp.float32(0.0)


# ----------------------------------------------------------------------------
# pure-JAX references
#   emulate_bf16=True  : exactly the kernel's math (bf16 operands, folded scale)
#   emulate_bf16=False : original full-f32 module semantics
# ----------------------------------------------------------------------------
def _ref_loss2_mean(rim, rtt, ltxt, limg, ruim, rutt, scale, offset, emulate_bf16):
    R = rim.shape[0]
    L = ltxt.shape[0]
    scale = jnp.asarray(scale, jnp.float32)
    if emulate_bf16:
        rim_b = rim.astype(jnp.bfloat16)
        rtt_b = rtt.astype(jnp.bfloat16)
        ltxt_f = ltxt.astype(jnp.bfloat16).astype(jnp.float32)
        limg_f = limg.astype(jnp.bfloat16).astype(jnp.float32)
        rim_s = (rim_b.astype(jnp.float32) * scale).astype(jnp.bfloat16).astype(jnp.float32)
        rtt_s = (rtt_b.astype(jnp.float32) * scale).astype(jnp.bfloat16).astype(jnp.float32)
        rtt_f = rtt_b.astype(jnp.float32)
        diag = jnp.sum(rim_s * rtt_f, axis=-1, keepdims=True)
        diff_im = rim_s @ ltxt_f.T - diag
        diff_tt = rtt_s @ limg_f.T - diag
    else:
        diag = jnp.sum(rim * rtt, axis=-1, keepdims=True)
        diff_im = (rim @ ltxt.T - diag) * scale
        diff_tt = (rtt @ limg.T - diag) * scale
    rows = jnp.arange(R)[:, None]
    cols = jnp.arange(L)[None, :]
    mask = (rows != cols + offset).astype(jnp.float32)
    total = (jnp.sum(diff_im * jnp.exp(diff_im - ruim) * mask)
             + jnp.sum(diff_tt * jnp.exp(diff_tt - rutt) * mask))
    return total / (jnp.float32(L) * jnp.float32(R - 1))


def _ref_forward(features, remote_features, remote_u, loss1, u, logit_scale,
                 offset, *, rho=8.0, loss_weight=1.0, emulate_bf16=False):
    limg, ltxt = features
    rim, rtt = remote_features
    ruim, rutt = remote_u
    loss1_im, loss1_tt = loss1
    u_im, u_tt = u
    logit_scale = jnp.asarray(logit_scale, jnp.float32)
    loss2_mean = _ref_loss2_mean(rim, rtt, ltxt, limg, ruim, rutt,
                                 logit_scale, offset, emulate_bf16)
    loss = (jnp.mean(loss1_im + loss1_tt) + loss2_mean) / 2.0
    loss = loss / logit_scale + rho / logit_scale \
        + jnp.mean(u_im + u_tt) / 2.0 / logit_scale
    return loss * loss_weight


# ----------------------------------------------------------------------------
if __name__ == "__main__":
    def unit_norm(x):
        return x / jnp.linalg.norm(x, axis=-1, keepdims=True)

    def run_case(key, L, R, D, offset, logit_scale, same_local_remote,
                 tile_rows=None, tile_cols=None):
        ks = jax.random.split(key, 8)
        limg = unit_norm(jax.random.normal(ks[0], (L, D), jnp.float32))
        ltxt = unit_norm(jax.random.normal(ks[1], (L, D), jnp.float32))
        if same_local_remote:
            rim, rtt = limg, ltxt
        else:
            rim = unit_norm(jax.random.normal(ks[2], (R, D), jnp.float32))
            rtt = unit_norm(jax.random.normal(ks[3], (R, D), jnp.float32))
        ruim = jax.random.normal(ks[4], (R, 1), jnp.float32) * 0.5 + 2.0
        rutt = jax.random.normal(ks[5], (R, 1), jnp.float32) * 0.5 + 2.0
        loss1 = (jax.random.normal(ks[6], (L, 1), jnp.float32) * 0.1,
                 jax.random.normal(ks[7], (L, 1), jnp.float32) * 0.1)
        u = (ruim[:L], rutt[:L])
        features = (limg, ltxt)
        remote_features = (rim, rtt)
        remote_u = (ruim, rutt)
        sim = (rim @ ltxt.T, rtt @ limg.T)   # as the training loop would pass it

        loss, dist_loss = fast_clip_loss_forward(
            features, remote_features, remote_u, loss1, u, sim,
            logit_scale, offset, rho=8.0, loss_weight=1.0,
            tile_rows=tile_rows, tile_cols=tile_cols)
        loss = jax.block_until_ready(loss)
        dist_loss = jax.block_until_ready(dist_loss)

        ref_kernel_math = _ref_forward(features, remote_features, remote_u,
                                       loss1, u, logit_scale, offset,
                                       rho=8.0, loss_weight=1.0, emulate_bf16=True)
        ref_module_f32 = _ref_forward(features, remote_features, remote_u,
                                      loss1, u, logit_scale, offset,
                                      rho=8.0, loss_weight=1.0, emulate_bf16=False)
        # Tight: kernel machinery (tiling / masking / padding / accumulation).
        np.testing.assert_allclose(np.asarray(loss), np.asarray(ref_kernel_math),
                                   rtol=2e-3, atol=2e-3)
        # Loose: original f32 module semantics (bf16-MXU approximation).
        np.testing.assert_allclose(np.asarray(loss), np.asarray(ref_module_f32),
                                   rtol=5e-2, atol=1e-2)
        assert float(dist_loss) == 0.0

    key = jax.random.PRNGKey(0)
    k1, k2, k3 = jax.random.split(key, 3)

    # 1) single-device style: remote == local, offset 0, auto tiling.
    run_case(k1, L=16, R=16, D=32, offset=0, logit_scale=10.0,
             same_local_remote=True)

    # 2) multi-rank style with a ragged remote batch: offset != 0, forced small
    #    row tile -> exercises zero-padding, multi-step accumulation, and both
    #    the banded / off-band pl.when branches.
    run_case(k2, L=8, R=20, D=32, offset=8, logit_scale=10.0,
             same_local_remote=False, tile_rows=8)

    # 3) column-tiled grid (parallel axis over L) with multiple row tiles.
    run_case(k3, L=256, R=256, D=64, offset=0, logit_scale=10.0,
             same_local_remote=False, tile_rows=64, tile_cols=128)

    print("KERNEL_OK")
</pallas_src>

<mosaic_0001>
module attributes {stable_mosaic.version = 11 : i64} {
  func.func @_loss2_kernel(%arg0: i32, %arg1: i32, %arg2: memref<1xf32, #tpu.memory_space<smem>>, %arg3: memref<1xi32, #tpu.memory_space<smem>>, %arg4: memref<16x32xbf16, #tpu.memory_space<vmem>>, %arg5: memref<16x32xbf16, #tpu.memory_space<vmem>>, %arg6: memref<32x16xbf16, #tpu.memory_space<vmem>>, %arg7: memref<32x16xbf16, #tpu.memory_space<vmem>>, %arg8: memref<16x1xf32, #tpu.memory_space<vmem>>, %arg9: memref<16x1xf32, #tpu.memory_space<vmem>>, %arg10: memref<1x16xf32, #tpu.memory_space<vmem>>) attributes {dimension_semantics = [#tpu.dimension_semantics<parallel>, #tpu.dimension_semantics<arbitrary>], iteration_bounds = array<i64: 1, 1>, scalar_prefetch = 0 : i64, scratch_operands = 0 : i64, tpu.core_type = #tpu.core_type<tc>, window_params = [{transform_indices = @transform_0, window_bounds = array<i64: 1>}, {transform_indices = @transform_1, window_bounds = array<i64: 1>}, {transform_indices = @transform_2, window_bounds = array<i64: 16, 32>}, {transform_indices = @transform_3, window_bounds = array<i64: 16, 32>}, {pipeline_mode = #tpu.pipeline_mode<synchronous>, transform_indices = @transform_4, window_bounds = array<i64: 32, 16>}, {pipeline_mode = #tpu.pipeline_mode<synchronous>, transform_indices = @transform_5, window_bounds = array<i64: 32, 16>}, {transform_indices = @transform_6, window_bounds = array<i64: 16, 1>}, {transform_indices = @transform_7, window_bounds = array<i64: 16, 1>}, {transform_indices = @transform_8, window_bounds = array<i64: 1, 16>}]} {
    %c0_i32 = arith.constant 0 : i32
    %0 = arith.cmpi eq, %arg1, %c0_i32 : i32
    %1 = arith.extui %0 : i1 to i32
    %c0_i32_0 = arith.constant 0 : i32
    %2 = arith.cmpi ne, %1, %c0_i32_0 : i32
    scf.if %2 {
      %cst_11 = arith.constant 0.000000e+00 : f32
      %34 = vector.broadcast %cst_11 : f32 to vector<1x16xf32>
      %c0_12 = arith.constant 0 : index
      %c0_13 = arith.constant 0 : index
      %35 = vector.load %arg10[%c0_12, %c0_13] : memref<1x16xf32, #tpu.memory_space<vmem>>, vector<1x16xf32>
      tpu.vector_store %arg10[%c0_12, %c0_13], %34 {strides = array<i32>} : memref<1x16xf32, #tpu.memory_space<vmem>>, vector<1x16xf32>,
    } else {
    }
    %c0 = arith.constant 0 : index
    %3 = memref.load %arg2[%c0] : memref<1xf32, #tpu.memory_space<smem>>
    %c0_1 = arith.constant 0 : index
    %4 = memref.load %arg3[%c0_1] : memref<1xi32, #tpu.memory_space<smem>>
    %c16_i32 = arith.constant 16 : i32
    %5 = arith.muli %arg1, %c16_i32 : i32
    %c16_i32_2 = arith.constant 16 : i32
    %6 = arith.muli %arg0, %c16_i32_2 : i32
    %c0_3 = arith.constant 0 : index
    %c0_4 = arith.constant 0 : index
    %7 = vector.load %arg4[%c0_3, %c0_4] : memref<16x32xbf16, #tpu.memory_space<vmem>>, vector<16x32xbf16>
    %c0_5 = arith.constant 0 : index
    %c0_6 = arith.constant 0 : index
    %8 = vector.load %arg5[%c0_5, %c0_6] : memref<16x32xbf16, #tpu.memory_space<vmem>>, vector<16x32xbf16>
    %9 = arith.extf %7 : vector<16x32xbf16> to vector<16x32xf32>
    %10 = vector.broadcast %3 : f32 to vector<16x32xf32>
    %11 = arith.mulf %9, %10 : vector<16x32xf32>
    %12 = arith.truncf %11 : vector<16x32xf32> to vector<16x32xbf16>
    %13 = arith.extf %8 : vector<16x32xbf16> to vector<16x32xf32>
    %14 = vector.broadcast %3 : f32 to vector<16x32xf32>
    %15 = arith.mulf %13, %14 : vector<16x32xf32>
    %16 = arith.truncf %15 : vector<16x32xf32> to vector<16x32xbf16>
    %17 = arith.extf %12 : vector<16x32xbf16> to vector<16x32xf32>
    %18 = arith.extf %8 : vector<16x32xbf16> to vector<16x32xf32>
    %19 = arith.mulf %17, %18 : vector<16x32xf32>
    %cst = arith.constant dense<0.000000e+00> : vector<16xf32>
    %20 = vector.multi_reduction <add>, %19, %cst [1] : vector<16x32xf32> to vector<16xf32>
    %21 = vector.shape_cast %20 : vector<16xf32> to vector<16x1xf32>
    %22 = arith.addi %6, %4 : i32
    %c16_i32_7 = arith.constant 16 : i32
    %23 = arith.addi %22, %c16_i32_7 : i32
    %24 = arith.cmpi slt, %5, %23 : i32
    %c16_i32_8 = arith.constant 16 : i32
    %25 = arith.addi %5, %c16_i32_8 : i32
    %26 = arith.addi %6, %4 : i32
    %27 = arith.cmpi sgt, %25, %26 : i32
    %28 = arith.andi %24, %27 : i1
    %29 = arith.extui %28 : i1 to i32
    %c0_i32_9 = arith.constant 0 : i32
    %30 = arith.cmpi ne, %29, %c0_i32_9 : i32
    scf.if %30 {
      %c0_11 = arith.constant 0 : index
      %c0_12 = arith.constant 0 : index
      %34 = vector.load %arg10[%c0_11, %c0_12] : memref<1x16xf32, #tpu.memory_space<vmem>>, vector<1x16xf32>
      %35 = arith.addi %6, %4 : i32
      %36 = arith.subi %35, %5 : i32
      %37 = tpu.iota {dimensions = array<i32: 0>} : vector<16x16xi32>
      %38 = tpu.iota {dimensions = array<i32: 1>} : vector<16x16xi32>
      %39 = vector.broadcast %36 : i32 to vector<16x16xi32>
      %40 = arith.addi %38, %39 : vector<16x16xi32>
      %41 = arith.cmpi eq, %37, %40 : vector<16x16xi32>
      %c0_13 = arith.constant 0 : index
      %c0_14 = arith.constant 0 : index
      %42 = vector.load %arg6[%c0_13, %c0_14] : memref<32x16xbf16, #tpu.memory_space<vmem>>, vector<32x16xbf16>
      %cst_15 = arith.constant dense<0.000000e+00> : vector<16x16xf32>
      %43 = tpu.matmul %12, %42, %cst_15 {dimension_numbers = #tpu.dot_dimension_numbers<[1], [0], [0], [1], [0, 0, 1, 1], [], []>} : vector<16x32xbf16>, vector<32x16xbf16>, vector<16x16xf32> -> vector<16x16xf32>
      %44 = vector.broadcast %21 : vector<16x1xf32> to vector<16x16xf32>
      %45 = arith.subf %43, %44 : vector<16x16xf32>
      %c0_16 = arith.constant 0 : index
      %c0_17 = arith.constant 0 : index
      %46 = vector.load %arg8[%c0_16, %c0_17] : memref<16x1xf32, #tpu.memory_space<vmem>>, vector<16x1xf32>
      %47 = vector.broadcast %46 : vector<16x1xf32> to vector<16x16xf32>
      %48 = arith.subf %45, %47 : vector<16x16xf32>
      %49 = math.exp %48 : vector<16x16xf32>
      %50 = arith.mulf %45, %49 : vector<16x16xf32>
      %cst_18 = arith.constant 0.000000e+00 : f32
      %51 = vector.broadcast %cst_18 : f32 to vector<16x16xf32>
      %52 = arith.select %41, %51, %50 : vector<16x16xi1>, vector<16x16xf32>
      %cst_19 = arith.constant dense<0.000000e+00> : vector<16xf32>
      %53 = vector.multi_reduction <add>, %52, %cst_19 [0] : vector<16x16xf32> to vector<16xf32>
      %54 = vector.shape_cast %53 : vector<16xf32> to vector<1x16xf32>
      %c0_20 = arith.constant 0 : index
      %c0_21 = arith.constant 0 : index
      %55 = vector.load %arg7[%c0_20, %c0_21] : memref<32x16xbf16, #tpu.memory_space<vmem>>, vector<32x16xbf16>
      %cst_22 = arith.constant dense<0.000000e+00> : vector<16x16xf32>
      %56 = tpu.matmul %16, %55, %cst_22 {dimension_numbers = #tpu.dot_dimension_numbers<[1], [0], [0], [1], [0, 0, 1, 1], [], []>} : vector<16x32xbf16>, vector<32x16xbf16>, vector<16x16xf32> -> vector<16x16xf32>
      %57 = vector.broadcast %21 : vector<16x1xf32> to vector<16x16xf32>
      %58 = arith.subf %56, %57 : vector<16x16xf32>
      %c0_23 = arith.constant 0 : index
      %c0_24 = arith.constant 0 : index
      %59 = vector.load %arg9[%c0_23, %c0_24] : memref<16x1xf32, #tpu.memory_space<vmem>>, vector<16x1xf32>
      %60 = vector.broadcast %59 : vector<16x1xf32> to vector<16x16xf32>
      %61 = arith.subf %58, %60 : vector<16x16xf32>
      %62 = math.exp %61 : vector<16x16xf32>
      %63 = arith.mulf %58, %62 : vector<16x16xf32>
      %cst_25 = arith.constant 0.000000e+00 : f32
      %64 = vector.broadcast %cst_25 : f32 to vector<16x16xf32>
      %65 = arith.select %41, %64, %63 : vector<16x16xi1>, vector<16x16xf32>
      %cst_26 = arith.constant dense<0.000000e+00> : vector<16xf32>
      %66 = vector.multi_reduction <add>, %65, %cst_26 [0] : vector<16x16xf32> to vector<16xf32>
      %67 = vector.shape_cast %66 : vector<16xf32> to vector<1x16xf32>
      %68 = arith.addf %54, %67 : vector<1x16xf32>
      %69 = arith.addf %34, %68 : vector<1x16xf32>
      %c0_27 = arith.constant 0 : index
      %c0_28 = arith.constant 0 : index
      %70 = vector.load %arg10[%c0_27, %c0_28] : memref<1x16xf32, #tpu.memory_space<vmem>>, vector<1x16xf32>
      tpu.vector_store %arg10[%c0_27, %c0_28], %69 {strides = array<i32>} : memref<1x16xf32, #tpu.memory_space<vmem>>, vector<1x16xf32>,
    } else {
    }
    %true = arith.constant true
    %31 = arith.xori %28, %true : i1
    %32 = arith.extui %31 : i1 to i32
    %c0_i32_10 = arith.constant 0 : i32
    %33 = arith.cmpi ne, %32, %c0_i32_10 : i32
    scf.if %33 {
      %c0_11 = arith.constant 0 : index
      %c0_12 = arith.constant 0 : index
      %34 = vector.load %arg10[%c0_11, %c0_12] : memref<1x16xf32, #tpu.memory_space<vmem>>, vector<1x16xf32>
      %c0_13 = arith.constant 0 : index
      %c0_14 = arith.constant 0 : index
      %35 = vector.load %arg6[%c0_13, %c0_14] : memref<32x16xbf16, #tpu.memory_space<vmem>>, vector<32x16xbf16>
      %cst_15 = arith.constant dense<0.000000e+00> : vector<16x16xf32>
      %36 = tpu.matmul %12, %35, %cst_15 {dimension_numbers = #tpu.dot_dimension_numbers<[1], [0], [0], [1], [0, 0, 1, 1], [], []>} : vector<16x32xbf16>, vector<32x16xbf16>, vector<16x16xf32> -> vector<16x16xf32>
      %37 = vector.broadcast %21 : vector<16x1xf32> to vector<16x16xf32>
      %38 = arith.subf %36, %37 : vector<16x16xf32>
      %c0_16 = arith.constant 0 : index
      %c0_17 = arith.constant 0 : index
      %39 = vector.load %arg8[%c0_16, %c0_17] : memref<16x1xf32, #tpu.memory_space<vmem>>, vector<16x1xf32>
      %40 = vector.broadcast %39 : vector<16x1xf32> to vector<16x16xf32>
      %41 = arith.subf %38, %40 : vector<16x16xf32>
      %42 = math.exp %41 : vector<16x16xf32>
      %43 = arith.mulf %38, %42 : vector<16x16xf32>
      %cst_18 = arith.constant dense<0.000000e+00> : vector<16xf32>
      %44 = vector.multi_reduction <add>, %43, %cst_18 [0] : vector<16x16xf32> to vector<16xf32>
      %45 = vector.shape_cast %44 : vector<16xf32> to vector<1x16xf32>
      %c0_19 = arith.constant 0 : index
      %c0_20 = arith.constant 0 : index
      %46 = vector.load %arg7[%c0_19, %c0_20] : memref<32x16xbf16, #tpu.memory_space<vmem>>, vector<32x16xbf16>
      %cst_21 = arith.constant dense<0.000000e+00> : vector<16x16xf32>
      %47 = tpu.matmul %16, %46, %cst_21 {dimension_numbers = #tpu.dot_dimension_numbers<[1], [0], [0], [1], [0, 0, 1, 1], [], []>} : vector<16x32xbf16>, vector<32x16xbf16>, vector<16x16xf32> -> vector<16x16xf32>
      %48 = vector.broadcast %21 : vector<16x1xf32> to vector<16x16xf32>
      %49 = arith.subf %47, %48 : vector<16x16xf32>
      %c0_22 = arith.constant 0 : index
      %c0_23 = arith.constant 0 : index
      %50 = vector.load %arg9[%c0_22, %c0_23] : memref<16x1xf32, #tpu.memory_space<vmem>>, vector<16x1xf32>
      %51 = vector.broadcast %50 : vector<16x1xf32> to vector<16x16xf32>
      %52 = arith.subf %49, %51 : vector<16x16xf32>
      %53 = math.exp %52 : vector<16x16xf32>
      %54 = arith.mulf %49, %53 : vector<16x16xf32>
      %cst_24 = arith.constant dense<0.000000e+00> : vector<16xf32>
      %55 = vector.multi_reduction <add>, %54, %cst_24 [0] : vector<16x16xf32> to vector<16xf32>
      %56 = vector.shape_cast %55 : vector<16xf32> to vector<1x16xf32>
      %57 = arith.addf %45, %56 : vector<1x16xf32>
      %58 = arith.addf %34, %57 : vector<1x16xf32>
      %c0_25 = arith.constant 0 : index
      %c0_26 = arith.constant 0 : index
      %59 = vector.load %arg10[%c0_25, %c0_26] : memref<1x16xf32, #tpu.memory_space<vmem>>, vector<1x16xf32>
      tpu.vector_store %arg10[%c0_25, %c0_26], %58 {strides = array<i32>} : memref<1x16xf32, #tpu.memory_space<vmem>>, vector<1x16xf32>,
    } else {
    }
    return
  }
  func.func @transform_0(%arg0: i32, %arg1: i32) -> i32 {
    %c0_i32 = arith.constant 0 : i32
    %c0_i32_0 = arith.constant 0 : i32
    return %c0_i32 : i32
  }
  func.func @transform_1(%arg0: i32, %arg1: i32) -> i32 {
    %c0_i32 = arith.constant 0 : i32
    %c0_i32_0 = arith.constant 0 : i32
    return %c0_i32 : i32
  }
  func.func @transform_2(%arg0: i32, %arg1: i32) -> (i32, i32) {
    %c0_i32 = arith.constant 0 : i32
    %c0_i32_0 = arith.constant 0 : i32
    return %arg1, %c0_i32 : i32, i32
  }
  func.func @transform_3(%arg0: i32, %arg1: i32) -> (i32, i32) {
    %c0_i32 = arith.constant 0 : i32
    %c0_i32_0 = arith.constant 0 : i32
    return %arg1, %c0_i32 : i32, i32
  }
  func.func @transform_4(%arg0: i32, %arg1: i32) -> (i32, i32) {
    %c0_i32 = arith.constant 0 : i32
    %c0_i32_0 = arith.constant 0 : i32
    return %c0_i32, %arg0 : i32, i32
  }
  func.func @transform_5(%arg0: i32, %arg1: i32) -> (i32, i32) {
    %c0_i32 = arith.constant 0 : i32
    %c0_i32_0 = arith.constant 0 : i32
    return %c0_i32, %arg0 : i32, i32
  }
  func.func @transform_6(%arg0: i32, %arg1: i32) -> (i32, i32) {
    %c0_i32 = arith.constant 0 : i32
    %c0_i32_0 = arith.constant 0 : i32
    return %arg1, %c0_i32 : i32, i32
  }
  func.func @transform_7(%arg0: i32, %arg1: i32) -> (i32, i32) {
    %c0_i32 = arith.constant 0 : i32
    %c0_i32_0 = arith.constant 0 : i32
    return %arg1, %c0_i32 : i32, i32
  }
  func.func @transform_8(%arg0: i32, %arg1: i32) -> (i32, i32) {
    %c0_i32 = arith.constant 0 : i32
    %c0_i32_0 = arith.constant 0 : i32
    return %c0_i32, %arg0 : i32, i32
  }
}

</mosaic_0001>

<bundles_post_ra>
// kernel: tpu_custom_call.1
= control target key start
LH: loop header
LB: loop body
LE: loop exit
PB: predicated region body
PF: predicated region fallthrough
CT: control target
= control target key end

     0   :  { %s781_s0 = inlined_call_operand.<no memory space> [shape: f32[1], index: 0, kind: input, shape index: {}]   ;;  %s782_s1 = inlined_call_operand.<no memory space> [shape: s32[1], index: 1, kind: input, shape index: {}]   ;;  %s783_s2 = inlined_call_operand.vmem [shape: bf16[16,32], index: 2, kind: input, shape index: {}]   ;;  %s784_s3 = inlined_call_operand.vmem [shape: bf16[16,32], index: 3, kind: input, shape index: {}]   ;;  %s785_s4 = inlined_call_operand.vmem [shape: bf16[32,16], index: 4, kind: input, shape index: {}]   ;;  %s786_s5 = inlined_call_operand.vmem [shape: bf16[32,16], index: 5, kind: input, shape index: {}]   ;;  %s787_s6 = inlined_call_operand.vmem [shape: f32[16,1], index: 6, kind: input, shape index: {}]   ;;  %s788_s7 = inlined_call_operand.vmem [shape: f32[16,1], index: 7, kind: input, shape index: {}]   ;;  %s789_s8 = inlined_call_operand.hbm [shape: f32[1,16], index: 8, kind: output, shape index: {}]  }
   0x1   :  { %v500_v0 = vld [vmem:[%s783_s2] sm:$0xff]   ;;  %v49_v2 = vstv %s781_s0 }
   0x2   :  { %v504_v1 = vld [vmem:[%s784_s3] sm:$0xff]  }
   0x3   :  { %15 = vsyncpa [#allocation5], 0  ;;  %v501_v3 = vunpack.c.l.bf16 %v500_v0  ;;  %v502_v4 = vunpack.c.h.bf16 %v500_v0  ;;  %v505_v5 = vunpack.c.l.bf16 %v504_v1  ;;  %v506_v6 = vunpack.c.h.bf16 %v504_v1  ;;  %s70_s3 = sadd.s32 16, %s782_s1  ;;  %p486_p1 = scmp.lt.s32.totalorder %s782_s1, 16 }
   0x4   :  { %vm62_vm0 = vcmask 261120   ;;  %p485_p0 = scmp.gt.s32.totalorder %s70_s3, 0  ;;  %vm37_vm1 = vcmask 122880   ;;  %v611_v19 = vmov 0.0  }
   0x5   :  { %v50_v7 = vmul.f32 %v501_v3, %v49_v2  ;;  %v51_v8 = vmul.f32 %v502_v4, %v49_v2  ;;  %v55_v9 = vmul.f32 %v505_v5, %v49_v2  ;;  %v56_v10 = vmul.f32 %v506_v6, %v49_v2  ;;  %38 = vst.msk [vmem:[#allocation4] sm:$0x1] %vm37_vm1, %v611_v19 }
   0x6   :  { %p688_p2 = pnand %p486_p1, %p485_p0 }
   0x7   :  { %v673_v11 = vpack.c.bf16 %v51_v8, %v50_v7  ;;  %v675_v12 = vpack.c.bf16 %v56_v10, %v55_v9  ;;  %v561_v22 = vld [vmem:[%s785_s4] sm:$0xff] (!%p688_p2)   ;;  %v612_v23 = vmov (!%p688_p2), 0.0   ;;  %v563_v25 = vld [vmem:[%s785_s4 + $0x8] sm:$0xff] (!%p688_p2)   ;;  %vm613_vm2 = vmmov (!%p688_p2), 0  }
   0x8   :  { %519 = vmatprep.subr.bf16.mxu0 (!%p688_p2), %v612_v23  ;;  %527 = vmatprep.subr.bf16.mxu1 (!%p688_p2), %v612_v23  ;;  %v562_v24 = vld [vmem:[%s786_s5] sm:$0xff] (!%p688_p2)   ;;  %v564_v26 = vld [vmem:[%s786_s5 + $0x8] sm:$0xff] (!%p688_p2)   ;;  %v614_v29 = vmov (!%p688_p2), 0   ;;  %v80_v50 = vlaneseq (!%p688_p2)  ;;  %v85_v58 = vstv (!%p688_p2), %s782_s1  ;;  %vm173_vm5 = vcmask (!%p688_p2), 130048  }
   0x9   :  { %v58_v13 = vunpack.c.l.bf16 %v673_v11  ;;  %v59_v14 = vunpack.c.h.bf16 %v673_v11  ;;  %520 = vmatpush3.bf16.msra.mxu0 (!%p688_p2), %v561_v22  ;;  %523 = vmatprep.mubr.msk.bf16.mxu0 (!%p688_p2), %vm613_vm2, %v612_v23  ;;  %v245_v27 = vld [vmem:[%s788_s7] sm:$0xff] (!%p688_p2)  ;;  %v246_v30 = vld [vmem:[%s788_s7 + $0x8] sm:$0xff] (!%p688_p2) }
   0xa   :  { %528 = vmatpush3.bf16.msra.mxu1 (!%p688_p2), %v562_v24  ;;  %521 = vmatprep.subr.bf16.mxu0 (!%p688_p2), %v612_v23  ;;  %v151_v28 = vld [vmem:[%s787_s6] sm:$0xff] (!%p688_p2)  ;;  %v152_v31 = vld [vmem:[%s787_s6 + $0x8] sm:$0xff] (!%p688_p2)  ;;  %v84_v57 = vand.u32 (!%p688_p2), 127, %v80_v50  ;;  %v81_v59 = vshrl.u32 (!%p688_p2), %v80_v50, 7 }
   0xb   :  { %v60_v15 = vmul.f32 %v505_v5, %v58_v13  ;;  %v61_v16 = vmul.f32 %v506_v6, %v59_v14  ;;  %529 = vmatprep.subr.bf16.mxu1 (!%p688_p2), %v612_v23  ;;  %531 = vmatprep.mubr.msk.bf16.mxu1 (!%p688_p2), %vm613_vm2, %v612_v23 }
   0xc   :  { %560 = vset.pattern.permute.xlu1 (!%p688_p2), %v614_v29  ;;  %559 = vset.pattern.permute.xlu0 (!%p688_p2), %v614_v29  ;;  %v86_v60 = vadd.s32 (!%p688_p2), %v85_v58, %v84_v57  ;;  %v82_v61 = vadd.s32 (!%p688_p2), 8, %v81_v59 }
   0xd   :  { %v63_v17 = vsel %vm62_vm0, %v60_v15, 0.0  ;;  %v66_v18 = vsel %vm62_vm0, %v61_v16, 0.0  ;;  %522 = vmatpush3.bf16.msra.mxu0 (!%p688_p2), %v563_v25  ;;  %249 = vperm.xlu1 (!%p688_p2), %560, %v245_v27  }
   0xe   :  { %64 = vadd.xlane.f32.xlu0 %v63_v17  ;;  %530 = vmatpush3.bf16.msra.mxu1 (!%p688_p2), %v564_v26  ;;  %vm87_vm3 = vcmp.eq.s32.totalorder (!%p688_p2), %v81_v59, %v86_v60  ;;  %vm88_vm4 = vcmp.eq.s32.totalorder (!%p688_p2), %v82_v61, %v86_v60 }
  0x10   :  { %524 = vmatmul.mubr.msk.bf16.vlgmr.msra.gmra.mrb[0].mxu0 (!%p688_p2), %vm62_vm0, %v673_v11 }
  0x11   :  { %532 = vmatmul.mubr.msk.bf16.vlgmr.msra.gmra.mrb[0].mxu1 (!%p688_p2), %vm62_vm0, %v675_v12  ;;  %254 = vperm.xlu1 (!%p688_p2), %560, %v246_v30  }
  0x12   :  { %67 = vadd.xlane.f32.xlu0 %v66_v18 }
  0x28   :  { %155 = vperm.xlu0 (!%p688_p2), %559, %v151_v28  }
  0x2c   :  { %160 = vperm.xlu0 (!%p688_p2), %559, %v152_v31  }
  0x8c   :  { %v250_v33 = vpop.permute.xlu1 (!%p688_p2), %249 }
  0x90   :  { %v255_v49 = vpop.permute.xlu1 (!%p688_p2), %254 }
  0x99   :  { %77 = sbr.rel (%p688_p2) target bundleno = 271 (0x10f), region = 41 }
  0x9b   :  { %v692_v20 = vpop.xlane.xlu0 %64 }
  0x9f   :  { %v694_v21 = vpop.xlane.xlu0 %67 }
  0xa7   :  { %v156_v32 = vpop.permute.xlu0 %155 }
  0xab   :  { %v161_v45 = vpop.permute.xlu0 %160 }
  0xe3   :  { %v142_v34 = vpop.f32.mrb[0].mxu0 }
  0xe4   :  { %v149_v35 = vsub.f32 %v142_v34, %v692_v20  ;;  %v236_v36 = vpop.f32.mrb[0].mxu1  ;;  %v525_v37 = vpop.f32.mrb[1].mxu0 }
  0xe5   :  { %v243_v38 = vsub.f32 %v236_v36, %v692_v20  ;;  %v533_v39 = vpop.f32.mrb[1].mxu1  ;;  %v145_v40 = vpop.f32.mrb[2].mxu0 }
  0xe6   :  { %v163_v41 = vsub.f32 %v149_v35, %v156_v32  ;;  %v150_v42 = vsub.f32 %v145_v40, %v694_v21  ;;  %v239_v43 = vpop.f32.mrb[2].mxu1  ;;  %v526_v44 = vpop.f32.mrb[3].mxu0  ;;  %v78_v32 = vld [vmem:[#allocation4] sm:$0x1] }
  0xe7   :  { %v257_v46 = vsub.f32 %v243_v38, %v250_v33  ;;  %v244_v47 = vsub.f32 %v239_v43, %v694_v21  ;;  %v534_v48 = vpop.f32.mrb[3].mxu1 }
  0xe8   :  { %v165_v51 = vmul.f32 1.442695, %v163_v41  ;;  %v164_v52 = vsub.f32 %v150_v42, %v161_v45 }
  0xe9   :  { %v259_v53 = vmul.f32 1.442695, %v257_v46  ;;  %v258_v54 = vsub.f32 %v244_v47, %v255_v49 }
  0xea   :  { %565 = vpow2.f32 %v165_v51  ;;  %v167_v55 = vmul.f32 1.442695, %v164_v52 }
  0xeb   :  { %567 = vpow2.f32 %v259_v53  ;;  %v261_v56 = vmul.f32 1.442695, %v258_v54 }
  0xec   :  { %569 = vpow2.f32 %v167_v55 }
  0xed   :  { %571 = vpow2.f32 %v261_v56 }
  0xf4   :  { %v566_v62 = vpop.eup %565 }
  0xf5   :  { %v568_v63 = vpop.eup %567  ;;  %v169_v0 = vmul.f32 %v566_v62, %v149_v35 }
  0xf6   :  { %v570_v1 = vpop.eup %569  ;;  %v263_v2 = vmul.f32 %v568_v63, %v243_v38 }
  0xf7   :  { %v572_v3 = vpop.eup %571  ;;  %v171_v4 = vsel %vm87_vm3, 0.0, %v169_v0  ;;  %v170_v5 = vmul.f32 %v570_v1, %v150_v42 }
  0xf8   :  { %v265_v6 = vsel %vm87_vm3, 0.0, %v263_v2  ;;  %v264_v7 = vmul.f32 %v572_v3, %v244_v47  ;;  %v174_v9 = vsel %vm173_vm5, %v171_v4, 0.0 }
  0xf9   :  { %v172_v8 = vsel %vm88_vm4, 0.0, %v170_v5  ;;  %v267_v14 = vsel %vm173_vm5, %v265_v6, 0.0 }
  0xfa   :  { %v175_v10 = vsel %vm173_vm5, %v172_v8, 0.0  ;;  %v266_v13 = vsel %vm88_vm4, 0.0, %v264_v7 }
  0xfb   :  { %v176_v15 = vadd.f32 %v175_v10, %v174_v9  ;;  %v268_v16 = vsel %vm173_vm5, %v266_v13, 0.0 }
  0xfc   :  { %v269_v17 = vadd.f32 %v268_v16, %v267_v14 }
  0xfd   :  { %v177_v18 = vrot.slane %v176_v15, 4 }
  0xfe   :  { %v270_v19 = vrot.slane %v269_v17, 4 }
  0xff   :  { %v178_v22 = vadd.f32 %v177_v18, %v176_v15 }
 0x100   :  { %v271_v23 = vadd.f32 %v270_v19, %v269_v17 }
 0x101   :  { %v179_v24 = vrot.slane %v178_v22, 2 }
 0x102   :  { %v272_v25 = vrot.slane %v271_v23, 2 }
 0x103   :  { %v180_v26 = vadd.f32 %v179_v24, %v178_v22 }
 0x104   :  { %v273_v27 = vadd.f32 %v272_v25, %v271_v23 }
 0x105   :  { %v181_v28 = vrot.slane %v180_v26, 1 }
 0x106   :  { %v274_v29 = vrot.slane %v273_v27, 1 }
 0x107   :  { %v182_v30 = vadd.f32 %v181_v28, %v180_v26 }
 0x108   :  { %v275_v31 = vadd.f32 %v274_v29, %v273_v27 }
 0x10a   :  { %v276_v33 = vadd.f32 %v275_v31, %v182_v30 }
 0x10c   :  { %v277_v34 = vadd.f32 %v276_v33, %v78_v32 }
 0x10e   :  { %279 = vst.msk [vmem:[#allocation4] sm:$0x1] %vm37_vm1, %v277_v34 }
 0x10f PF:  { %282 = sbr.rel (!%p688_p2) target bundleno = 534 (0x216), region = 45  ;;  %v575_v35 = vld [vmem:[%s785_s4] sm:$0xff] (%p688_p2)   ;;  %v615_v36 = vmov (%p688_p2), 0.0   ;;  %v577_v38 = vld [vmem:[%s785_s4 + $0x8] sm:$0xff] (%p688_p2)   ;;  %vm616_vm6 = vmmov (%p688_p2), 0   ;;  %v617_v42 = vmov (%p688_p2), 0  }
 0x110   :  { %535 = vmatprep.subr.bf16.mxu0 (%p688_p2), %v615_v36  ;;  %543 = vmatprep.subr.bf16.mxu1 (%p688_p2), %v615_v36  ;;  %v576_v37 = vld [vmem:[%s786_s5] sm:$0xff] (%p688_p2)   ;;  %v578_v39 = vld [vmem:[%s786_s5 + $0x8] sm:$0xff] (%p688_p2)   ;;  %vm366_vm7 = vcmask (%p688_p2), 130048  }
 0x111   :  { %536 = vmatpush3.bf16.msra.mxu0 (%p688_p2), %v575_v35  ;;  %539 = vmatprep.mubr.msk.bf16.mxu0 (%p688_p2), %vm616_vm6, %v615_v36  ;;  %v438_v40 = vld [vmem:[%s788_s7] sm:$0xff] (%p688_p2)  ;;  %v439_v43 = vld [vmem:[%s788_s7 + $0x8] sm:$0xff] (%p688_p2) }
 0x112   :  { %544 = vmatpush3.bf16.msra.mxu1 (%p688_p2), %v576_v37  ;;  %537 = vmatprep.subr.bf16.mxu0 (%p688_p2), %v615_v36  ;;  %v346_v41 = vld [vmem:[%s787_s6] sm:$0xff] (%p688_p2)  ;;  %v347_v44 = vld [vmem:[%s787_s6 + $0x8] sm:$0xff] (%p688_p2) }
 0x113   :  { %545 = vmatprep.subr.bf16.mxu1 (%p688_p2), %v615_v36  ;;  %547 = vmatprep.mubr.msk.bf16.mxu1 (%p688_p2), %vm616_vm6, %v615_v36 }
 0x114   :  { %574 = vset.pattern.permute.xlu1 (%p688_p2), %v617_v42  ;;  %573 = vset.pattern.permute.xlu0 (%p688_p2), %v617_v42 }
 0x115   :  { %538 = vmatpush3.bf16.msra.mxu0 (%p688_p2), %v577_v38  ;;  %442 = vperm.xlu1 (%p688_p2), %574, %v438_v40   ;;  %v283_v31 = vld [vmem:[#allocation4] sm:$0x1] (%p688_p2) }
 0x116   :  { %546 = vmatpush3.bf16.msra.mxu1 %v578_v39  ;;  %350 = vperm.xlu0 %573, %v346_v41  }
 0x118   :  { %540 = vmatmul.mubr.msk.bf16.vlgmr.msra.gmra.mrb[0].mxu0 %vm62_vm0, %v673_v11 }
 0x119   :  { %548 = vmatmul.mubr.msk.bf16.vlgmr.msra.gmra.mrb[0].mxu1 %vm62_vm0, %v675_v12  ;;  %447 = vperm.xlu1 %574, %v439_v43  }
 0x11a   :  { %355 = vperm.xlu0 %573, %v347_v44  }
 0x194   :  { %v443_v46 = vpop.permute.xlu1 %442 }
 0x195   :  { %v351_v45 = vpop.permute.xlu0 %350 }
 0x198   :  { %v448_v60 = vpop.permute.xlu1 %447 }
 0x199   :  { %v356_v57 = vpop.permute.xlu0 %355 }
 0x1eb   :  { %v337_v47 = vpop.f32.mrb[0].mxu0 }
 0x1ec   :  { %v344_v48 = vsub.f32 %v337_v47, %v692_v20  ;;  %v429_v49 = vpop.f32.mrb[0].mxu1  ;;  %v541_v50 = vpop.f32.mrb[1].mxu0 }
 0x1ed   :  { %v436_v51 = vsub.f32 %v429_v49, %v692_v20  ;;  %v549_v52 = vpop.f32.mrb[1].mxu1  ;;  %v340_v53 = vpop.f32.mrb[2].mxu0 }
 0x1ee   :  { %v358_v54 = vsub.f32 %v344_v48, %v351_v45  ;;  %v345_v55 = vsub.f32 %v340_v53, %v694_v21  ;;  %v432_v11 = vpop.f32.mrb[2].mxu1  ;;  %v542_v56 = vpop.f32.mrb[3].mxu0 }
 0x1ef   :  { %v450_v12 = vsub.f32 %v436_v51, %v443_v46  ;;  %v437_v58 = vsub.f32 %v432_v11, %v694_v21  ;;  %v550_v59 = vpop.f32.mrb[3].mxu1 }
 0x1f0   :  { %v360_v61 = vmul.f32 1.442695, %v358_v54  ;;  %v359_v62 = vsub.f32 %v345_v55, %v356_v57 }
 0x1f1   :  { %v452_v63 = vmul.f32 1.442695, %v450_v12  ;;  %v451_v0 = vsub.f32 %v437_v58, %v448_v60 }
 0x1f2   :  { %579 = vpow2.f32 %v360_v61  ;;  %v362_v1 = vmul.f32 1.442695, %v359_v62 }
 0x1f3   :  { %581 = vpow2.f32 %v452_v63  ;;  %v454_v20 = vmul.f32 1.442695, %v451_v0 }
 0x1f4   :  { %583 = vpow2.f32 %v362_v1 }
 0x1f5   :  { %585 = vpow2.f32 %v454_v20 }
 0x1fc   :  { %v580_v2 = vpop.eup %579 }
 0x1fd   :  { %v582_v3 = vpop.eup %581  ;;  %v364_v4 = vmul.f32 %v580_v2, %v344_v48 }
 0x1fe   :  { %v584_v5 = vpop.eup %583  ;;  %v456_v6 = vmul.f32 %v582_v3, %v436_v51 }
 0x1ff   :  { %v586_v7 = vpop.eup %585  ;;  %v365_v21 = vmul.f32 %v584_v5, %v345_v55  ;;  %v367_v9 = vsel %vm366_vm7, %v364_v4, 0.0 }
 0x200   :  { %v457_v8 = vmul.f32 %v586_v7, %v437_v58  ;;  %v458_v13 = vsel %vm366_vm7, %v456_v6, 0.0 }
 0x201   :  { %v368_v10 = vsel %vm366_vm7, %v365_v21, 0.0 }
 0x202   :  { %v369_v14 = vadd.f32 %v368_v10, %v367_v9  ;;  %v459_v15 = vsel %vm366_vm7, %v457_v8, 0.0 }
 0x203   :  { %v460_v16 = vadd.f32 %v459_v15, %v458_v13 }
 0x204   :  { %v370_v17 = vrot.slane %v369_v14, 4 }
 0x205   :  { %v461_v18 = vrot.slane %v460_v16, 4 }
 0x206   :  { %v371_v19 = vadd.f32 %v370_v17, %v369_v14 }
 0x207   :  { %v462_v22 = vadd.f32 %v461_v18, %v460_v16 }
 0x208   :  { %v372_v23 = vrot.slane %v371_v19, 2 }
 0x209   :  { %v463_v24 = vrot.slane %v462_v22, 2 }
 0x20a   :  { %v373_v25 = vadd.f32 %v372_v23, %v371_v19 }
 0x20b   :  { %v464_v26 = vadd.f32 %v463_v24, %v462_v22 }
 0x20c   :  { %v374_v27 = vrot.slane %v373_v25, 1 }
 0x20d   :  { %v465_v28 = vrot.slane %v464_v26, 1 }
 0x20e   :  { %v375_v29 = vadd.f32 %v374_v27, %v373_v25 }
 0x20f   :  { %v466_v30 = vadd.f32 %v465_v28, %v464_v26 }
 0x211   :  { %v467_v32 = vadd.f32 %v466_v30, %v375_v29 }
 0x213   :  { %v468_v33 = vadd.f32 %v467_v32, %v283_v31 }
 0x215   :  { %470 = vst.msk [vmem:[#allocation4] sm:$0x1] %vm37_vm1, %v468_v33 }
 0x216 PF:  { %s618_s6 = smov [#allocation4]  }
 0x217   :  { %s477_s7 = sshll.u32 %s618_s6, 4  ;;  %s478_s7 = int_to_ptr.vmem [resolvable:$true] %s477_s7 }
 0x218   :  { %s587_s20 = scalar_lea.vmem %s478_s7, 16  ;;  %s591_s21 = scalar_lea.vmem %s478_s7, 32 }
 0x219   :  { %p588_p3 = scmp.ne.s32.totalorder %s478_s7, %s587_s20  ;;  %p592_p4 = scmp.lt.s32.totalorder %s478_s7, %s478_s7 }
 0x21a   :  { %p593_p5 = scmp.lt.s32.totalorder %s591_s21, %s587_s20 }
 0x21c   :  { %p594_p6 = por %p593_p5, %p592_p4 }
 0x21e   :  { %p595_p7 = pnand %p594_p6, %p588_p3 }
 0x220   :  { %598 = shalt.err (!%p595_p7)
}
 0x221   :  { %s599_s24 = scalar_lea.hbm %s789_s8, 16 }
 0x222   :  { %p600_p8 = scmp.ne.s32.totalorder %s789_s8, %s599_s24  ;;  %p603_p9 = scmp.lt.u32.totalorder %s599_s24, %s789_s8 }
 0x224   :  { %p605_p10 = pnand %p603_p9, %p600_p8 }
 0x226   :  { %608 = shalt.err (!%p605_p10)
}
 0x227   :  { %480 = dma.vmem_to_hbm [thread:$0]  %s478_s7, 16, %s789_s8, [#allocation5]  }
 0x228   :  { %609 = dma.done.wait [#allocation5], 16  }
 0x229   :  { %610 = vsyncadd [#allocation5], 4294967280 }
 0x22a   :  { %484 = vsyncpa [#allocation5], 1 }

</bundles_post_ra>
